<compile_context>
chip_gen: v7x
topology: tpu7x:2x2x1
jax: 0.10.0
libtpu: 0.0.40
codegen_flags: <defaults>
</compile_context>

<pallas_src>
import math
import functools

import jax
import jax.numpy as jnp
from jax.experimental import pallas as pl
from jax.experimental.pallas import tpu as pltpu


def _dot_attn_kernel(q_ref, k_ref, o_ref, qs_ref, *, scale, compute_dtype):
    # q_ref: (bb, tq, D), k_ref: (bb, tk, D), o_ref: (bb, tq, tk)
    # qs_ref: (bb, tq, D) VMEM scratch holding the scaled / cast Q tile.
    #
    # The Q tile is resident across the innermost k-tile axis (its block index
    # ignores j), so do its VPU work (scale + optional downcast) only once per
    # Q tile instead of Lk/tk times.
    @pl.when(pl.program_id(2) == 0)
    def _():
        q = q_ref[...]
        if scale != 1.0:
            # Fold 1/sqrt(D) into Q before the matmul: O(tq*D) multiplies in
            # full precision instead of O(tq*tk) on the logits tile.
            q = q * jnp.asarray(scale, dtype=q.dtype)
        qs_ref[...] = q.astype(qs_ref.dtype)

    k = k_ref[...]
    if compute_dtype is not None:
        k = k.astype(compute_dtype)

    # logits[b, i, j] = sum_d q[b, i, d] * k[b, j, d]   (MXU, f32 accumulation)
    logits = jax.lax.dot_general(
        qs_ref[...], k,
        dimension_numbers=(((2,), (2,)), ((0,), (0,))),
        preferred_element_type=jnp.float32,
    )
    o_ref[...] = logits.astype(o_ref.dtype)


def _vmem_capacity_bytes():
    # Per-generation VMEM (v5e/v6e: 128 MiB, v7x: 64 MiB).  Fall back to the
    # smallest-VMEM generation if the query is unavailable.
    try:
        return int(pltpu.get_tpu_info().vmem_capacity_bytes)
    except Exception:
        return 64 << 20


def _choose_blocks(B, Lq, Lk, D, in_isz, cmp_isz, out_isz, budget):
    """D-, dtype- and VMEM-aware tile selection.

    Footprint model (bytes): 2*(Q + K + OUT) double-buffered tiles plus the
    single-buffered scaled-Q scratch.  Q is the resident operand (its DMA is
    skipped across the inner j loop), so it gets the larger tile: total K
    re-read HBM traffic is (Lq/tq)*Lk*D and shrinks with bigger tq.
    """
    def footprint(bb, tq, tk):
        q = bb * tq * D * in_isz
        k = bb * tk * D * in_isz
        o = bb * tq * tk * out_isz
        s = bb * tq * D * cmp_isz
        return 2 * (q + k + o) + s

    # Full-dim blocks are always layout-legal; partial blocks keep tq a
    # multiple of 8 (sublane) and tk a multiple of 128 (lane-dense stores).
    tq_cands = ([Lq] if Lq <= 2048 else []) + [
        t for t in (2048, 1024, 512, 256, 128, 64, 32, 16, 8) if t < Lq]
    tk_cands = ([Lk] if Lk <= 1024 else []) + [
        t for t in (1024, 512, 256, 128) if t < Lk]

    tq, tk = tq_cands[-1], tk_cands[-1]
    done = False
    for cq in tq_cands:            # prefer big tq (cuts K re-reads) ...
        for ck in tk_cands:        # ... then big tk (cuts per-step overhead)
            if footprint(1, cq, ck) <= budget:
                tq, tk, done = cq, ck, True
                break
        if done:
            break
    # TODO(synk): for extreme D (>~32K f32) even the minimum tiles overflow
    # VMEM; that would need an innermost 'arbitrary' D-tile axis with an f32
    # accumulator, not implemented here.

    bb = 1
    if done and tq == Lq and tk == Lk and B > 1:
        # Whole per-batch problem fits in one tile: fold batches into a single
        # grid step to amortize the ~600-cycle (~0.35 us) per-step overhead.
        per = footprint(1, tq, tk)
        bb = max(1, min(B, budget // max(per, 1)))
        # Keep grid[0] >= 2 so v7x's second TensorCore is never starved.
        bb = min(bb, max(1, B // 2))
    return bb, tq, tk


def dot_attn(queries, keys, is_scale=True, compute_dtype="auto"):
    """Pallas TPU DotAttn.forward.

    queries: (B, Lq, D), keys: (B, Lk, D) -> logits (B, Lq, Lk)

    compute_dtype:
      "auto"  -> bf16 MXU operands (f32 accumulation) for f32 inputs when
                 D >= 256; otherwise the input dtype.  The bf16 path trades
                 ~1e-2 relative precision for MXU rate / bandwidth.
      None    -> always use the input dtype for the matmul operands.
      a dtype -> explicit operand dtype.
    """
    B, Lq, D = queries.shape
    Bk, Lk, Dk = keys.shape
    assert B == Bk and D == Dk, (queries.shape, keys.shape)

    if compute_dtype == "auto":
        compute_dtype = (
            jnp.bfloat16 if (queries.dtype == jnp.float32 and D >= 256) else None)

    scale = (1.0 / math.sqrt(D)) if is_scale else 1.0

    in_isz = jnp.dtype(queries.dtype).itemsize
    out_isz = in_isz
    scratch_dtype = compute_dtype if compute_dtype is not None else queries.dtype
    cmp_isz = jnp.dtype(scratch_dtype).itemsize

    # Per-generation VMEM limit: ~3/4 of physical capacity, capped at 100 MiB
    # (v5e/v6e -> 96 MiB, v7x -> 48 MiB); tiles are sized against 85% of it.
    vmem_limit = min(100 << 20, max(32 << 20, (_vmem_capacity_bytes() * 3) // 4))
    budget = int(vmem_limit * 0.85)

    bb, tq, tk = _choose_blocks(B, Lq, Lk, D, in_isz, cmp_isz, out_isz, budget)

    kernel = functools.partial(
        _dot_attn_kernel, scale=scale, compute_dtype=compute_dtype)

    grid = (pl.cdiv(B, bb), pl.cdiv(Lq, tq), pl.cdiv(Lk, tk))

    # TODO(synk): (a) if these logits feed a softmax, a fused flash-style
    # kernel that never materializes [B, Lq, Lk] in HBM is the largest possible
    # win; (b) when Lk < 128 the output stores are masked (vst.msk) -- a
    # wrapper-side lane-dense reshape of the folded output would avoid that but
    # is omitted here for simplicity.
    return pl.pallas_call(
        kernel,
        out_shape=jax.ShapeDtypeStruct((B, Lq, Lk), queries.dtype),
        grid_spec=pltpu.PrefetchScalarGridSpec(
            num_scalar_prefetch=0,
            grid=grid,
            in_specs=[
                # Q block index ignores j -> stays resident across the inner
                # k-tile loop (DMA skipped); K is the streamed operand.
                pl.BlockSpec((bb, tq, D), lambda b, i, j: (b, i, 0)),
                pl.BlockSpec((bb, tk, D), lambda b, i, j: (b, j, 0)),
            ],
            out_specs=pl.BlockSpec((bb, tq, tk), lambda b, i, j: (b, i, j)),
            scratch_shapes=[pltpu.VMEM((bb, tq, D), scratch_dtype)],
        ),
        compiler_params=pltpu.CompilerParams(
            # j must be 'arbitrary': the scaled-Q scratch is written at j == 0
            # and reused for j > 0, so one (b, i) block's j steps cannot be
            # split across cores.  b / i are independent -> megacore shards
            # over them on v7x.
            dimension_semantics=("parallel", "parallel", "arbitrary"),
            vmem_limit_bytes=vmem_limit,
        ),
    )(queries, keys)


if __name__ == "__main__":
    key = jax.random.PRNGKey(0)
    kq, kk = jax.random.split(key)

    B, Lq, Lk, D = 2, 8, 8, 32
    queries = jax.random.normal(kq, (B, Lq, D), dtype=jnp.float32)
    keys = jax.random.normal(kk, (B, Lk, D), dtype=jnp.float32)

    # scaled path (matches DotAttn(is_scale=True).forward)
    out = jax.block_until_ready(dot_attn(queries, keys, is_scale=True))
    ref = jnp.einsum("bqd,bkd->bqk", queries, keys) / math.sqrt(D)
    assert out.shape == (B, Lq, Lk)
    assert jnp.allclose(out, ref, atol=1e-5, rtol=1e-5)

    # unscaled path
    out_ns = jax.block_until_ready(dot_attn(queries, keys, is_scale=False))
    ref_ns = jnp.einsum("bqd,bkd->bqk", queries, keys)
    assert jnp.allclose(out_ns, ref_ns, atol=1e-5, rtol=1e-5)

    print("KERNEL_OK")
</pallas_src>

<mosaic_0001>
module attributes {stable_mosaic.version = 11 : i64} {
  func.func @_dot_attn_kernel(%arg0: i32, %arg1: i32, %arg2: i32, %arg3: memref<1x8x32xf32, #tpu.memory_space<vmem>>, %arg4: memref<1x8x32xf32, #tpu.memory_space<vmem>>, %arg5: memref<1x8x8xf32, #tpu.memory_space<vmem>>, %arg6: memref<1x8x32xf32, #tpu.memory_space<vmem>>) attributes {dimension_semantics = [#tpu.dimension_semantics<parallel>, #tpu.dimension_semantics<parallel>, #tpu.dimension_semantics<arbitrary>], iteration_bounds = array<i64: 2, 1, 1>, scalar_prefetch = 0 : i64, scratch_operands = 1 : i64, tpu.core_type = #tpu.core_type<tc>, window_params = [{transform_indices = @transform_0, window_bounds = array<i64: 1, 8, 32>}, {transform_indices = @transform_1, window_bounds = array<i64: 1, 8, 32>}, {transform_indices = @transform_2, window_bounds = array<i64: 1, 8, 8>}]} {
    %c0_i32 = arith.constant 0 : i32
    %0 = arith.cmpi eq, %arg2, %c0_i32 : i32
    %1 = arith.extui %0 : i1 to i32
    %c0_i32_0 = arith.constant 0 : i32
    %2 = arith.cmpi ne, %1, %c0_i32_0 : i32
    scf.if %2 {
      %c0_9 = arith.constant 0 : index
      %c0_10 = arith.constant 0 : index
      %c0_11 = arith.constant 0 : index
      %7 = vector.load %arg3[%c0_9, %c0_10, %c0_11] : memref<1x8x32xf32, #tpu.memory_space<vmem>>, vector<1x8x32xf32>
      %cst_12 = arith.constant 0.176776692 : f32
      %8 = vector.broadcast %cst_12 : f32 to vector<1x8x32xf32>
      %9 = arith.mulf %7, %8 : vector<1x8x32xf32>
      %c0_13 = arith.constant 0 : index
      %c0_14 = arith.constant 0 : index
      %c0_15 = arith.constant 0 : index
      %10 = vector.load %arg6[%c0_13, %c0_14, %c0_15] : memref<1x8x32xf32, #tpu.memory_space<vmem>>, vector<1x8x32xf32>
      tpu.vector_store %arg6[%c0_13, %c0_14, %c0_15], %9 {strides = array<i32>} : memref<1x8x32xf32, #tpu.memory_space<vmem>>, vector<1x8x32xf32>,
    } else {
    }
    %c0 = arith.constant 0 : index
    %c0_1 = arith.constant 0 : index
    %c0_2 = arith.constant 0 : index
    %3 = vector.load %arg4[%c0, %c0_1, %c0_2] : memref<1x8x32xf32, #tpu.memory_space<vmem>>, vector<1x8x32xf32>
    %c0_3 = arith.constant 0 : index
    %c0_4 = arith.constant 0 : index
    %c0_5 = arith.constant 0 : index
    %4 = vector.load %arg6[%c0_3, %c0_4, %c0_5] : memref<1x8x32xf32, #tpu.memory_space<vmem>>, vector<1x8x32xf32>
    %cst = arith.constant dense<0.000000e+00> : vector<1x8x8xf32>
    %5 = tpu.matmul %4, %3, %cst {dimension_numbers = #tpu.dot_dimension_numbers<[2], [2], [1], [1], [0, 0, 0, 1, 1, 1], [0], [0]>} : vector<1x8x32xf32>, vector<1x8x32xf32>, vector<1x8x8xf32> -> vector<1x8x8xf32>
    %c0_6 = arith.constant 0 : index
    %c0_7 = arith.constant 0 : index
    %c0_8 = arith.constant 0 : index
    %6 = vector.load %arg5[%c0_6, %c0_7, %c0_8] : memref<1x8x8xf32, #tpu.memory_space<vmem>>, vector<1x8x8xf32>
    tpu.vector_store %arg5[%c0_6, %c0_7, %c0_8], %5 {strides = array<i32>} : memref<1x8x8xf32, #tpu.memory_space<vmem>>, vector<1x8x8xf32>,
    return
  }
  func.func @transform_0(%arg0: i32, %arg1: i32, %arg2: i32) -> (i32, i32, i32) {
    %c0_i32 = arith.constant 0 : i32
    %c0_i32_0 = arith.constant 0 : i32
    return %arg0, %arg1, %c0_i32 : i32, i32, i32
  }
  func.func @transform_1(%arg0: i32, %arg1: i32, %arg2: i32) -> (i32, i32, i32) {
    %c0_i32 = arith.constant 0 : i32
    %c0_i32_0 = arith.constant 0 : i32
    return %arg0, %arg2, %c0_i32 : i32, i32, i32
  }
  func.func @transform_2(%arg0: i32, %arg1: i32, %arg2: i32) -> (i32, i32, i32) {
    %c0_i32 = arith.constant 0 : i32
    return %arg0, %arg1, %arg2 : i32, i32, i32
  }
}

</mosaic_0001>

<bundles_post_ra>
// kernel: tpu_custom_call.1
= control target key start
LH: loop header
LB: loop body
LE: loop exit
PB: predicated region body
PF: predicated region fallthrough
CT: control target
= control target key end

     0   :  { %7 = vsyncpa [#allocation4], 0  ;;  %s920_s0 = inlined_call_operand.hbm [shape: f32[2,8,32], index: 0, kind: input, shape index: {}]   ;;  %s921_s1 = inlined_call_operand.hbm [shape: f32[2,8,32], index: 1, kind: input, shape index: {}]   ;;  %s922_s2 = inlined_call_operand.hbm [shape: f32[2,8,8], index: 2, kind: output, shape index: {}]  }
   0x1   :  { %9 = vsyncpa [#allocation4 + $0x1], 0 }
   0x2   :  { %10 = vsyncpa [#allocation7], 0 }
   0x3   :  { %12 = vsyncpa [#allocation7 + $0x1], 0 }
   0x4   :  { %13 = vsyncpa [#allocation5], 0 }
   0x5   :  { %15 = vsyncpa [#allocation5 + $0x1], 0  ;;  %s700_s9 = smov 0   ;;  %s702_s10 = smov 0  }
   0x6   :  { %s704_s11 = smov 0   ;;  %s706_s12 = smov 0  }
   0x7   :  { %s708_s13 = smov 0   ;;  %s710_s14 = smov 0  }
   0x8 LB: > { %s438_s15 = sadd.s32 4294967295, %s678_s14   ;;  %s439_s16 = sadd.s32 4294967294, %s678_s14   ;;  %s678_s14 = sphi %s710_s14, %s21_s14   ;;  %s674_s13 = sphi %s708_s13, %s942_s13   ;;  %s670_s12 = sphi %s706_s12, %s941_s12   ;;  %s666_s11 = sphi %s704_s11, %s940_s11   ;;  %s662_s10 = sphi %s702_s10, %s939_s10   ;;  %s658_s9 = sphi %s700_s9, %s938_s9  }
   0x9   : > { %s40_s17 = sadd.s32 1, %s674_s13  ;;  %s49_s18 = sadd.s32 1, %s666_s11 }
   0xa   : > { %p42_p0 = scmp.ge.s32.totalorder %s40_s17, 2  ;;  %p56_p1 = scmp.ne.s32.totalorder %s666_s11, %s662_s10 }
   0xb   : > { %p57_p2 = scmp.eq.s32.totalorder %s678_s14, 0  ;;  %p62_p3 = scmp.ne.s32.totalorder %s662_s10, %s658_s9 }
   0xc   : > { %s944_s17 = smov (%p42_p0, %s40_s17), 0  ;;  %p63_p5 = scmp.eq.s32.totalorder %s438_s15, 0 }
   0xd   : > { %p741_p4 = por %p57_p2, %p56_p1  ;;  %s44_s20 = ssub.s32 %s674_s13, %s944_s17 }
   0xe   : > { %p118_p6 = scmp.eq.s32.totalorder %s438_s15, 1  ;;  %p47_p7 = scmp.eq.s32.totalorder %s44_s20, 0 }
   0xf   : > { %p747_p8 = por %p63_p5, %p62_p3  ;;  %p124_p10 = scmp.eq.s32.totalorder %s439_s16, 1 }
  0x10   : > { %p751_p9 = por %p118_p6, %p56_p1  ;;  %p480_p13 = scmp.lt.s32.totalorder %s678_s14, 2 }
  0x11   : > { %s926_s21 = scalar_select %p747_p8, 1, 0 }
  0x12   : > { %s927_s22 = scalar_select %p751_p9, 1, 0 }
  0x13   : > { %s756_s23 = scalar_select %p47_p7, %s666_s11, %s49_s18  }
  0x14   : > { %p758_p11 = por %p124_p10, %p62_p3  ;;  %s765_s25 = sand.u32 1, %s666_s11  }
  0x15   : > { %s442_s26 = sshll.u32 %s765_s25, 3  ;;  %s443_s27 = sshll.u32 %s674_s13, 7 }
  0x16   : > { %s928_s24 = scalar_select %p758_p11, 1, 0 }
  0x17   : > { %s774_s30 = scalar_lea.hbm %s920_s0, %s443_s27  ;;  %s148_s3 = scalar_lea.vmem [#allocation3], %s442_s26 }
  0x18   : > { %s156_s4 = sshll.u32 %s148_s3, 4  ;;  %p782_p0 = pnand %p480_p13, %p741_p4  ;;  %s778_s4 = int_to_ptr.vmem [resolvable:$true] %s156_s4 }
  0x19   : > { %s145_s6 = scalar_lea.sflag [#allocation4], %s765_s25  ;;  %s532_s7 = scalar_lea.hbm %s774_s30, 128 }
  0x1a   : > { %p533_p3 = scmp.ne.s32.totalorder %s774_s30, %s532_s7  ;;  %p534_p5 = pneg %p782_p0 }
  0x1b   : > { %s537_s16 = scalar_lea.hbm %s920_s0, 256  ;;  %p538_p4 = scmp.lt.u32.totalorder %s774_s30, %s920_s0 }
  0x1c   : > { %p535_p6 = pnand %p534_p5, %p533_p3  ;;  %p539_p10 = scmp.lt.u32.totalorder %s537_s16, %s532_s7 }
  0x1d   : > { %p541_p12 = scmp.lt.u32.totalorder %s532_s7, %s774_s30 }
  0x1e   : > { %p536_p7 = pneg %p535_p6  ;;  %p540_p13 = por %p539_p10, %p538_p4 }
  0x20   : > { %p542_p1 = por %p541_p12, %p540_p13 }
  0x22   : > { %p543_p2 = pnand %p542_p1, %p536_p7 }
  0x24   : > { %546 = shalt.err (!%p543_p2)
}
  0x25   : > { %s547_s20 = scalar_lea.vmem %s778_s4, 128  ;;  %s680_s28 = smov [#allocation3]  }
  0x26   : > { %p548_p3 = scmp.ne.s32.totalorder %s778_s4, %s547_s20  ;;  %s552_s29 = sshll.u32 %s680_s28, 4  ;;  %s553_s29 = int_to_ptr.vmem [resolvable:$false] %s552_s29 }
  0x27   : > { %s554_s3 = scalar_lea.vmem %s553_s29, 256  ;;  %p555_p9 = scmp.lt.s32.totalorder %s778_s4, %s553_s29 }
  0x28   : > { %p550_p6 = pnand %p548_p3, %p534_p5  ;;  %p556_p4 = scmp.lt.s32.totalorder %s554_s3, %s547_s20 }
  0x2a   : > { %p551_p11 = pneg %p550_p6  ;;  %p557_p10 = por %p556_p4, %p555_p9 }
  0x2c   : > { %p558_p12 = pnand %p557_p10, %p551_p11 }
  0x2e   : > { %561 = shalt.err (!%p558_p12)
}
  0x2f   : > { %472 = dma.hbm_to_vmem [thread:$0]  (!%p782_p0), %s774_s30, 128, %s778_s4, %s145_s6  }
  0x30   : > { %p930_p1 = scmp.lt.s32.totalorder %s678_s14, 3  ;;  %p931_p2 = scmp.ge.s32.totalorder %s678_s14, 1 }
  0x31   : > { %s827_s16 = scalar_lea.hbm %s921_s1, %s443_s27  ;;  %s167_s18 = scalar_lea.vmem [#allocation6], %s442_s26 }
  0x32   : > { %p818_p7 = pnand %p931_p2, %p930_p1  ;;  %s175_s19 = sshll.u32 %s167_s18, 4  ;;  %s176_s19 = int_to_ptr.vmem [resolvable:$true] %s175_s19 }
  0x33   : > { %s164_s30 = scalar_lea.sflag [#allocation7], %s765_s25  ;;  %s562_s4 = scalar_lea.hbm %s827_s16, 128 }
  0x34   : > { %s932_s7 = scalar_select %p818_p7, 1, 0 }
  0x35   : > { %p563_p9 = scmp.ne.s32.totalorder %s827_s16, %s562_s4  ;;  %s567_s27 = scalar_lea.hbm %s921_s1, 256 }
  0x36   : > { %p568_p3 = scmp.lt.u32.totalorder %s827_s16, %s921_s1  ;;  %p569_p6 = scmp.lt.u32.totalorder %s567_s27, %s562_s4 }
  0x37   : > { %p565_p11 = pnand %p563_p9, %p534_p5  ;;  %p571_p10 = scmp.lt.u32.totalorder %s562_s4, %s827_s16 }
  0x38   : > { %p570_p4 = por %p569_p6, %p568_p3 }
  0x39   : > { %p566_p13 = pneg %p565_p11 }
  0x3a   : > { %p572_p12 = por %p571_p10, %p570_p4 }
  0x3c   : > { %p573_p1 = pnand %p572_p12, %p566_p13 }
  0x3e   : > { %576 = shalt.err (!%p573_p1)
}
  0x3f   : > { %s577_s25 = scalar_lea.vmem %s176_s19, 128  ;;  %s681_s26 = smov [#allocation6]  }
  0x40   : > { %p578_p2 = scmp.ne.s32.totalorder %s176_s19, %s577_s25  ;;  %s582_s3 = sshll.u32 %s681_s26, 4  ;;  %s583_s3 = int_to_ptr.vmem [resolvable:$false] %s582_s3 }
  0x41   : > { %s584_s8 = scalar_lea.vmem %s583_s3, 256  ;;  %p585_p8 = scmp.lt.s32.totalorder %s176_s19, %s583_s3 }
  0x42   : > { %p580_p9 = pnand %p578_p2, %p534_p5  ;;  %p586_p7 = scmp.lt.s32.totalorder %s584_s8, %s577_s25 }
  0x44   : > { %p581_p11 = pneg %p580_p9  ;;  %p587_p3 = por %p586_p7, %p585_p8 }
  0x46   : > { %p588_p6 = pnand %p587_p3, %p581_p11 }
  0x48   : > { %591 = shalt.err (!%p588_p6)
}
  0x49   : > { %475 = dma.hbm_to_vmem [thread:$0]  (!%p782_p0), %s827_s16, 128, %s176_s19, %s164_s30  }
  0x4a   : > { %p933_p13 = scmp.ne.s32.totalorder %s932_s7, 0 }
  0x4b   : > { %s854_s15 = sand.u32 (!%p933_p13), 1, %s662_s10   ;;  %p934_p5 = scmp.ne.s32.totalorder (!%p933_p13), %s926_s21, 0 }
  0x4c   : > { %184 = sbr.rel (%p933_p13) target bundleno = 323 (0x143), region = 28  ;;  %s447_s18 = sshll.u32 (!%p933_p13), %s854_s15, 3 }
  0x4d   : > { %s187_s4 = scalar_lea.sflag (!%p933_p13), [#allocation4], %s854_s15  ;;  %s190_s6 = scalar_lea.vmem (!%p933_p13), [#allocation3], %s447_s18 }
  0x53   : > { %645 = dma.done.wait (%p934_p5), %s187_s4, 128  }
  0x54   : > { %647 = vsyncadd (%p934_p5), %s187_s4, 4294967168  ;;  %s196_s5 = scalar_lea.sflag [#allocation7], %s854_s15  ;;  %s199_s16 = scalar_lea.vmem [#allocation6], %s447_s18 }
  0x55   : > { %649 = dma.done.wait (%p934_p5), %s196_s5, 128  }
  0x56   : > { %651 = vsyncadd (%p934_p5), %s196_s5, 4294967168  ;;  %v682_v0 = vmov 0.0   ;;  %vm683_vm0 = vmmov 0   ;;  %v229_v1 = vld [vmem:[%s190_s6] sm:$0xff]  ;;  %vm231_vm1 = vcmask 261120   ;;  %v233_v2 = vld [vmem:[%s199_s16] sm:$0xff] }
  0x57   : > { %458 = vmatprep.subr.mxu0 %v682_v0  ;;  %460 = vmatprep.mubr.msk.f32.mxu0 %vm683_vm0, %v682_v0  ;;  %v230_v3 = vmul.f32 0.17677669, %v229_v1  ;;  %s453_s7 = sshll.u32 %s670_s12, 7  ;;  %s224_s19 = scalar_lea.vmem [#allocation8], %s447_s18  ;;  %vm312_vm2 = vcmask 64512  }
  0x58   : > { %459 = vmatpush3.xpose.msk.msra.mxu0 %vm231_vm1, %v233_v2  ;;  %s330_s30 = sshll.u32 %s224_s19, 4  ;;  %s871_s27 = scalar_lea.hbm %s922_s2, %s453_s7  ;;  %s873_s30 = int_to_ptr.vmem [resolvable:$true] %s330_s30 }
  0x59   : > { %232 = vst.msk [vmem:[#allocation2] sm:$0xff] %vm231_vm1, %v230_v3  ;;  %s315_s28 = scalar_lea.sflag [#allocation5], %s854_s15  ;;  %s592_s29 = scalar_lea.vmem %s873_s30, 128 }
  0x5a   : > { %p593_p8 = scmp.ne.s32.totalorder %s873_s30, %s592_s29  ;;  %p935_p0 = scmp.ne.s32.totalorder %s927_s22, 0 }
  0x5b   : > { %s684_s12 = smov [#allocation8]  }
  0x5c   : > { %p594_p7 = pnand %p593_p8, %p935_p0  ;;  %s596_s25 = sshll.u32 %s684_s12, 4  ;;  %s597_s25 = int_to_ptr.vmem [resolvable:$false] %s596_s25 }
  0x5d   : > { %s598_s26 = scalar_lea.vmem %s597_s25, 256  ;;  %p599_p10 = scmp.lt.s32.totalorder %s873_s30, %s597_s25 }
  0x5e   : > { %p595_p4 = pneg %p594_p7  ;;  %p600_p12 = scmp.lt.s32.totalorder %s598_s26, %s592_s29 }
  0x60   : > { %v234_v4 = vld [vmem:[#allocation2] sm:$0xff]  ;;  %p601_p1 = por %p600_p12, %p599_p10 }
  0x61   : > { %461 = vmatmul.mubr.msk.f32.vlgmr.msra.gmra.mrb[0].mxu0 %vm231_vm1, %v234_v4 }
  0x62   : > { %p602_p2 = pnand %p601_p1, %p595_p4 }
 0x134   : > { %v308_v5 = vpop.f32.mrb[0].mxu0 }
 0x135   : > { %313 = vst.msk [vmem:[%s224_s19] sm:$0xff] %vm312_vm2, %v308_v5  ;;  %v462_v6 = vpop.f32.mrb[1].mxu0 }
 0x136   : > { %605 = shalt.err (!%p602_p2)
}
 0x137   : > { %s606_s3 = scalar_lea.hbm %s871_s27, 128  ;;  %s610_s18 = scalar_lea.hbm %s922_s2, 256 }
 0x138   : > { %p607_p9 = scmp.ne.s32.totalorder %s871_s27, %s606_s3  ;;  %p611_p6 = scmp.lt.u32.totalorder %s871_s27, %s922_s2 }
 0x139   : > { %p612_p13 = scmp.lt.u32.totalorder %s610_s18, %s606_s3  ;;  %p614_p8 = scmp.lt.u32.totalorder %s606_s3, %s871_s27 }
 0x13a   : > { %p608_p11 = pnand %p607_p9, %p935_p0 }
 0x13b   : > { %p613_p5 = por %p612_p13, %p611_p6 }
 0x13c   : > { %p609_p3 = pneg %p608_p11 }
 0x13d   : > { %p615_p7 = por %p614_p8, %p613_p5 }
 0x13f   : > { %p616_p4 = pnand %p615_p7, %p609_p3 }
 0x141   : > { %619 = shalt.err (!%p616_p4)
}
 0x142   : > { %467 = dma.vmem_to_hbm [thread:$0]  (%p935_p0), %s873_s30, 128, %s871_s27, %s315_s28  }
 0x143 PF: > { %s342_s5 = sand.u32 1, %s658_s9   ;;  %p936_p10 = scmp.ne.s32.totalorder %s928_s24, 0 }
 0x144   : > { %p937_p12 = scmp.ge.s32.totalorder %s678_s14, 2  ;;  %s343_s16 = scalar_lea.sflag [#allocation5], %s342_s5 }
 0x146   : > { %p477_p1 = pnand %p937_p12, %p936_p10 }
 0x148   : > { %653 = dma.done.wait (!%p477_p1), %s343_s16, 128  }
 0x149   : > { %655 = vsyncadd (!%p477_p1), %s343_s16, 4294967168  ;;  %s21_s14 = sadd.s32 1, %s678_s14   ;;  %s938_s9 = smov %s662_s10 }
 0x14a   : > { %p18_p2 = scmp.ge.s32.totalorder %s21_s14, 4   ;;  %s939_s10 = smov %s666_s11 }
 0x14b   : > { %s940_s11 = smov %s756_s23  ;;  %s941_s12 = smov %s674_s13 }
 0x14c   : > { %s942_s13 = smov %s944_s17  ;;  %20 = sbr.rel (!%p18_p2) target bundleno = 8 (0x8), region = 90 }
 0x153   :  { %348 = vsyncpa [#allocation4], 1 }
 0x154   :  { %350 = vsyncpa [#allocation4 + $0x1], 1 }
 0x155   :  { %351 = vsyncpa [#allocation7], 1 }
 0x156   :  { %353 = vsyncpa [#allocation7 + $0x1], 1 }
 0x157   :  { %354 = vsyncpa [#allocation5], 1 }
 0x158   :  { %356 = vsyncpa [#allocation5 + $0x1], 1 }

</bundles_post_ra>
